<compile_context>
chip_gen: v6e
topology: v6e:2x2x1
jax: 0.10.0
libtpu: 0.0.40
codegen_flags: <defaults>
</compile_context>

<pallas_src>
import jax
import jax.numpy as jnp
from jax.experimental import pallas as pl
from jax.experimental.pallas import tpu as pltpu

BN_EPS = 1e-5
LANE = 128
SUBLANE = 8


def _round_up(x, m):
    return (x + m - 1) // m * m


def _pad2d(x, rows, cols):
    return jnp.pad(x, ((0, rows - x.shape[0]), (0, cols - x.shape[1])))


# ------------------------------ fused kernel ------------------------------- #

def _gcn_fused_kernel(x_ref, wt_ref, b_ref, root_ref, scale_ref, shift_ref,
                      a_ref, dinv_ref, pool_ref, wpt_ref, bp_ref,
                      out_ref, h_ref):
    """One grid step == one GCN layer; the last step also pools + predicts.

    h_ref: VMEM f32 scratch carrying node features across the layer loop.
    """
    l = pl.program_id(0)
    last = pl.num_programs(0) - 1

    @pl.when(l == 0)
    def _():
        h_ref[...] = x_ref[...]

    # Linear: xw = h @ W^T + b        (bf16 into the MXU, f32 accumulation)
    h_bf16 = h_ref[...].astype(jnp.bfloat16)
    xw = jnp.dot(h_bf16, wt_ref[...],
                 preferred_element_type=jnp.float32) + b_ref[...]

    # message + add-aggregation: agg[i] = sum_j A_norm[i, j] * relu(xw[j])
    msg = jnp.maximum(xw, 0.0).astype(jnp.bfloat16)
    agg = jnp.dot(a_ref[...], msg, preferred_element_type=jnp.float32)

    # self term: relu(xw + root_emb) / deg
    self_term = jnp.maximum(xw + root_ref[...], 0.0) * dinv_ref[...]

    # BatchNorm1d (eval) folded into scale/shift on the host.
    hn = (agg + self_term) * scale_ref[...] + shift_ref[...]
    # NOTE: dropout is identity at inference time; residual=False; JK='last'.

    @pl.when(l != last)
    def _():
        h_ref[...] = jnp.maximum(hn, 0.0)          # ReLU on all but last layer

    @pl.when(l == last)
    def _():
        # global mean pool as a dense matmul, then the prediction Linear.
        hg = jnp.dot(pool_ref[...], hn.astype(jnp.bfloat16),
                     preferred_element_type=jnp.float32)
        out_ref[...] = (jnp.dot(hg.astype(jnp.bfloat16), wpt_ref[...],
                                preferred_element_type=jnp.float32)
                        + bp_ref[...])


# ------------------------------ host wrapper ------------------------------- #

def gcn_forward(x, wt, b, root, scale, shift, a_norm, deg_inv, pool_mat,
                wpt, bp):
    L, Dp, _ = wt.shape
    Np = x.shape[0]
    Bp = pool_mat.shape[0]
    Cp = wpt.shape[1]

    def whole(shape):
        # resident across the whole layer loop (constant block index)
        return pl.BlockSpec(shape, lambda l: (0,) * len(shape))

    def per_layer(shape):
        # leading (L, ...) axis: stream block l, squeeze the layer dim away
        return pl.BlockSpec((None,) + shape, lambda l: (l,) + (0,) * len(shape))

    grid_spec = pltpu.PrefetchScalarGridSpec(
        num_scalar_prefetch=0,
        grid=(L,),
        in_specs=[
            whole((Np, Dp)),        # x (f32)
            per_layer((Dp, Dp)),    # W^T stacked (bf16)
            per_layer((1, Dp)),     # bias
            per_layer((1, Dp)),     # root_emb
            per_layer((1, Dp)),     # BN scale
            per_layer((1, Dp)),     # BN shift
            whole((Np, Np)),        # A_norm (bf16)
            whole((Np, 1)),         # 1/deg
            whole((Bp, Np)),        # mean-pool matrix (bf16)
            whole((Dp, Cp)),        # W_pred^T (bf16)
            whole((1, Cp)),         # b_pred
        ],
        out_specs=pl.BlockSpec((Bp, Cp), lambda l: (0, 0)),
        scratch_shapes=[pltpu.VMEM((Np, Dp), jnp.float32)],
    )
    return pl.pallas_call(
        _gcn_fused_kernel,
        out_shape=jax.ShapeDtypeStruct((Bp, Cp), jnp.float32),
        grid_spec=grid_spec,
        compiler_params=pltpu.CompilerParams(
            dimension_semantics=("arbitrary",)),   # sequential layer loop
    )(x, wt, b, root, scale, shift, a_norm, deg_inv, pool_mat, wpt, bp)


# --------------------------- parameters / graph ----------------------------- #

def init_params(key, num_layer, emb_dim, num_classes):
    layers = []
    for _ in range(num_layer):
        key, k1, k2, k3 = jax.random.split(key, 4)
        bound = 1.0 / jnp.sqrt(emb_dim)
        W = jax.random.uniform(k1, (emb_dim, emb_dim), jnp.float32, -bound, bound)
        b = jax.random.uniform(k2, (emb_dim,), jnp.float32, -bound, bound)
        root = jax.random.normal(k3, (emb_dim,), jnp.float32)   # Embedding(1, D)
        layers.append(dict(W=W, b=b, root=root,
                           gamma=jnp.ones((emb_dim,), jnp.float32),
                           beta=jnp.zeros((emb_dim,), jnp.float32),
                           mean=jnp.zeros((emb_dim,), jnp.float32),
                           var=jnp.ones((emb_dim,), jnp.float32)))
    key, k1, k2 = jax.random.split(key, 3)
    bound = 1.0 / jnp.sqrt(emb_dim)
    Wp = jax.random.uniform(k1, (num_classes, emb_dim), jnp.float32, -bound, bound)
    bp = jax.random.uniform(k2, (num_classes,), jnp.float32, -bound, bound)
    return layers, dict(Wp=Wp, bp=bp)


def pack_params(layers, head, num_classes, dp, cp):
    """Stack per-layer params, fold BN, zero-pad to lane-dense shapes."""
    def pad_vec(v):
        return jnp.pad(v, (0, dp - v.shape[0])).reshape(1, dp)

    wt, b, root, scale, shift = [], [], [], [], []
    for p in layers:
        s = p["gamma"] * jax.lax.rsqrt(p["var"] + BN_EPS)
        t = p["beta"] - p["mean"] * s
        wt.append(_pad2d(p["W"].T, dp, dp))
        b.append(pad_vec(p["b"]))
        root.append(pad_vec(p["root"]))
        scale.append(pad_vec(s))      # padded lanes -> 0 (keeps padding zero)
        shift.append(pad_vec(t))
    wt = jnp.stack(wt).astype(jnp.bfloat16)          # (L, Dp, Dp)
    b = jnp.stack(b)                                 # (L, 1, Dp) f32
    root = jnp.stack(root)
    scale = jnp.stack(scale)
    shift = jnp.stack(shift)
    wpt = _pad2d(head["Wp"].T, dp, cp).astype(jnp.bfloat16)        # (Dp, Cp)
    bp = jnp.pad(head["bp"], (0, cp - num_classes)).reshape(1, cp)
    return wt, b, root, scale, shift, wpt, bp


def build_graph_tensors(edge_index, batch, num_nodes, num_graphs):
    row, col = edge_index[0], edge_index[1]          # source, target
    ones = jnp.ones(row.shape, jnp.float32)
    deg = jnp.zeros((num_nodes,), jnp.float32).at[row].add(ones) + 1.0
    deg_inv_sqrt = jnp.where(deg > 0, deg ** -0.5, 0.0)
    norm = deg_inv_sqrt[row] * deg_inv_sqrt[col]
    # A_norm[target, source] accumulates edge norms -> agg = A_norm @ msg
    a_norm = jnp.zeros((num_nodes, num_nodes), jnp.float32).at[col, row].add(norm)
    deg_inv = (1.0 / deg).reshape(num_nodes, 1)
    # mean-pool matrix: P[g, n] = 1/|V_g| if batch[n] == g
    onehot = (batch[None, :] == jnp.arange(num_graphs)[:, None]).astype(jnp.float32)
    counts = jnp.maximum(onehot.sum(axis=1, keepdims=True), 1.0)
    pool_mat = onehot / counts
    return a_norm, deg_inv, pool_mat


# --------------------------- pure-JAX reference ----------------------------- #

def gcn_reference(x, layers, head, a_norm, deg_inv, pool_mat, num_layer):
    h = x
    for l, p in enumerate(layers):
        xw = h @ p["W"].T + p["b"]
        agg = a_norm @ jnp.maximum(xw, 0.0)
        self_term = jnp.maximum(xw + p["root"], 0.0) * deg_inv
        hn = agg + self_term
        hn = ((hn - p["mean"]) * jax.lax.rsqrt(p["var"] + BN_EPS)
              * p["gamma"] + p["beta"])
        if l != num_layer - 1:
            hn = jnp.maximum(hn, 0.0)
        h = hn
    hg = pool_mat @ h
    return hg @ head["Wp"].T + head["bp"]


# ----------------------------------- main ----------------------------------- #

if __name__ == "__main__":
    num_layer = 5
    emb_dim = 32
    num_classes = 8
    nodes_per_graph = 16
    num_graphs = 2
    N = nodes_per_graph * num_graphs

    Dp = _round_up(emb_dim, LANE)        # 128  lane-dense embedding dim
    Cp = _round_up(num_classes, LANE)    # 128  lane-dense prediction output
    Np = _round_up(N, LANE)              # 128  MXU-aligned node dim
    Bp = _round_up(num_graphs, SUBLANE)  # 8    sublane-aligned graph batch

    key = jax.random.PRNGKey(0)
    key, kx = jax.random.split(key)

    # deterministic batched graph: two 16-node bidirectional rings
    src, dst = [], []
    for g in range(num_graphs):
        off = g * nodes_per_graph
        for i in range(nodes_per_graph):
            j = (i + 1) % nodes_per_graph
            src += [off + i, off + j]
            dst += [off + j, off + i]
    edge_index = jnp.array([src, dst], dtype=jnp.int32)            # (2, E)
    batch = jnp.repeat(jnp.arange(num_graphs, dtype=jnp.int32), nodes_per_graph)

    # node features taken as already-embedded (AtomEncoder not provided)
    x = jax.random.normal(kx, (N, emb_dim), jnp.float32)

    layers, head = init_params(key, num_layer, emb_dim, num_classes)
    a_norm, deg_inv, pool_mat = build_graph_tensors(edge_index, batch, N,
                                                    num_graphs)

    # host-side packing: stack layers, fold BN, pad lane-dense, bf16 MXU feeds
    wt_s, b_s, root_s, scale_s, shift_s, wpt_p, bp_p = pack_params(
        layers, head, num_classes, Dp, Cp)
    x_p = _pad2d(x, Np, Dp)
    a_p = _pad2d(a_norm, Np, Np).astype(jnp.bfloat16)
    dinv_p = _pad2d(deg_inv, Np, 1)
    pool_p = _pad2d(pool_mat, Bp, Np).astype(jnp.bfloat16)

    preds_full = gcn_forward(x_p, wt_s, b_s, root_s, scale_s, shift_s,
                             a_p, dinv_p, pool_p, wpt_p, bp_p)
    preds_full = jax.block_until_ready(preds_full)
    preds = preds_full[:num_graphs, :num_classes]

    assert preds.shape == (num_graphs, num_classes)
    assert bool(jnp.all(jnp.isfinite(preds)))
    ref = gcn_reference(x, layers, head, a_norm, deg_inv, pool_mat, num_layer)
    assert bool(jnp.allclose(preds, ref, rtol=1e-1, atol=1e-1)), (
        "max abs err = %f" % float(jnp.max(jnp.abs(preds - ref))))
    print("KERNEL_OK")
</pallas_src>

<mosaic_0001>
module attributes {stable_mosaic.version = 11 : i64} {
  func.func @_gcn_fused_kernel(%arg0: i32, %arg1: memref<128x128xf32, #tpu.memory_space<vmem>>, %arg2: memref<1x128x128xbf16, #tpu.memory_space<vmem>>, %arg3: memref<1x1x128xf32, #tpu.memory_space<vmem>>, %arg4: memref<1x1x128xf32, #tpu.memory_space<vmem>>, %arg5: memref<1x1x128xf32, #tpu.memory_space<vmem>>, %arg6: memref<1x1x128xf32, #tpu.memory_space<vmem>>, %arg7: memref<128x128xbf16, #tpu.memory_space<vmem>>, %arg8: memref<128x1xf32, #tpu.memory_space<vmem>>, %arg9: memref<8x128xbf16, #tpu.memory_space<vmem>>, %arg10: memref<128x128xbf16, #tpu.memory_space<vmem>>, %arg11: memref<1x128xf32, #tpu.memory_space<vmem>>, %arg12: memref<8x128xf32, #tpu.memory_space<vmem>>, %arg13: memref<128x128xf32, #tpu.memory_space<vmem>>) attributes {dimension_semantics = [#tpu.dimension_semantics<arbitrary>], iteration_bounds = array<i64: 5>, scalar_prefetch = 0 : i64, scratch_operands = 1 : i64, tpu.core_type = #tpu.core_type<tc>, window_params = [{pipeline_mode = #tpu.pipeline_mode<synchronous>, transform_indices = @transform_0, window_bounds = array<i64: 128, 128>}, {transform_indices = @transform_1, window_bounds = array<i64: 1, 128, 128>}, {transform_indices = @transform_2, window_bounds = array<i64: 1, 1, 128>}, {transform_indices = @transform_3, window_bounds = array<i64: 1, 1, 128>}, {transform_indices = @transform_4, window_bounds = array<i64: 1, 1, 128>}, {transform_indices = @transform_5, window_bounds = array<i64: 1, 1, 128>}, {pipeline_mode = #tpu.pipeline_mode<synchronous>, transform_indices = @transform_6, window_bounds = array<i64: 128, 128>}, {pipeline_mode = #tpu.pipeline_mode<synchronous>, transform_indices = @transform_7, window_bounds = array<i64: 128, 1>}, {pipeline_mode = #tpu.pipeline_mode<synchronous>, transform_indices = @transform_8, window_bounds = array<i64: 8, 128>}, {pipeline_mode = #tpu.pipeline_mode<synchronous>, transform_indices = @transform_9, window_bounds = array<i64: 128, 128>}, {pipeline_mode = #tpu.pipeline_mode<synchronous>, transform_indices = @transform_10, window_bounds = array<i64: 1, 128>}, {pipeline_mode = #tpu.pipeline_mode<synchronous>, transform_indices = @transform_11, window_bounds = array<i64: 8, 128>}]} {
    %c0_i32 = arith.constant 0 : i32
    %0 = arith.cmpi eq, %arg0, %c0_i32 : i32
    %1 = arith.extui %0 : i1 to i32
    %c0_i32_0 = arith.constant 0 : i32
    %2 = arith.cmpi ne, %1, %c0_i32_0 : i32
    scf.if %2 {
      %c0_27 = arith.constant 0 : index
      %c0_28 = arith.constant 0 : index
      %41 = vector.load %arg1[%c0_27, %c0_28] : memref<128x128xf32, #tpu.memory_space<vmem>>, vector<128x128xf32>
      %c0_29 = arith.constant 0 : index
      %c0_30 = arith.constant 0 : index
      %42 = vector.load %arg13[%c0_29, %c0_30] : memref<128x128xf32, #tpu.memory_space<vmem>>, vector<128x128xf32>
      tpu.vector_store %arg13[%c0_29, %c0_30], %41 {strides = array<i32>} : memref<128x128xf32, #tpu.memory_space<vmem>>, vector<128x128xf32>,
    } else {
    }
    %c0 = arith.constant 0 : index
    %c0_1 = arith.constant 0 : index
    %3 = vector.load %arg13[%c0, %c0_1] : memref<128x128xf32, #tpu.memory_space<vmem>>, vector<128x128xf32>
    %4 = arith.truncf %3 : vector<128x128xf32> to vector<128x128xbf16>
    %c0_2 = arith.constant 0 : index
    %c0_3 = arith.constant 0 : index
    %c0_4 = arith.constant 0 : index
    %5 = vector.load %arg2[%c0_2, %c0_3, %c0_4] : memref<1x128x128xbf16, #tpu.memory_space<vmem>>, vector<1x128x128xbf16>
    %6 = vector.shape_cast %5 : vector<1x128x128xbf16> to vector<128x128xbf16>
    %cst = arith.constant dense<0.000000e+00> : vector<128x128xf32>
    %7 = tpu.matmul %4, %6, %cst {dimension_numbers = #tpu.dot_dimension_numbers<[1], [0], [0], [1], [0, 0, 1, 1], [], []>} : vector<128x128xbf16>, vector<128x128xbf16>, vector<128x128xf32> -> vector<128x128xf32>
    %c0_5 = arith.constant 0 : index
    %c0_6 = arith.constant 0 : index
    %c0_7 = arith.constant 0 : index
    %8 = vector.load %arg3[%c0_5, %c0_6, %c0_7] : memref<1x1x128xf32, #tpu.memory_space<vmem>>, vector<1x1x128xf32>
    %9 = vector.shape_cast %8 : vector<1x1x128xf32> to vector<1x128xf32>
    %10 = vector.broadcast %9 : vector<1x128xf32> to vector<128x128xf32>
    %11 = arith.addf %7, %10 : vector<128x128xf32>
    %cst_8 = arith.constant 0.000000e+00 : f32
    %12 = vector.broadcast %cst_8 : f32 to vector<128x128xf32>
    %13 = arith.maximumf %11, %12 : vector<128x128xf32>
    %14 = arith.truncf %13 : vector<128x128xf32> to vector<128x128xbf16>
    %c0_9 = arith.constant 0 : index
    %c0_10 = arith.constant 0 : index
    %15 = vector.load %arg7[%c0_9, %c0_10] : memref<128x128xbf16, #tpu.memory_space<vmem>>, vector<128x128xbf16>
    %cst_11 = arith.constant dense<0.000000e+00> : vector<128x128xf32>
    %16 = tpu.matmul %15, %14, %cst_11 {dimension_numbers = #tpu.dot_dimension_numbers<[1], [0], [0], [1], [0, 0, 1, 1], [], []>} : vector<128x128xbf16>, vector<128x128xbf16>, vector<128x128xf32> -> vector<128x128xf32>
    %c0_12 = arith.constant 0 : index
    %c0_13 = arith.constant 0 : index
    %c0_14 = arith.constant 0 : index
    %17 = vector.load %arg4[%c0_12, %c0_13, %c0_14] : memref<1x1x128xf32, #tpu.memory_space<vmem>>, vector<1x1x128xf32>
    %18 = vector.shape_cast %17 : vector<1x1x128xf32> to vector<1x128xf32>
    %19 = vector.broadcast %18 : vector<1x128xf32> to vector<128x128xf32>
    %20 = arith.addf %11, %19 : vector<128x128xf32>
    %cst_15 = arith.constant 0.000000e+00 : f32
    %21 = vector.broadcast %cst_15 : f32 to vector<128x128xf32>
    %22 = arith.maximumf %20, %21 : vector<128x128xf32>
    %c0_16 = arith.constant 0 : index
    %c0_17 = arith.constant 0 : index
    %23 = vector.load %arg8[%c0_16, %c0_17] : memref<128x1xf32, #tpu.memory_space<vmem>>, vector<128x1xf32>
    %24 = vector.broadcast %23 : vector<128x1xf32> to vector<128x128xf32>
    %25 = arith.mulf %22, %24 : vector<128x128xf32>
    %26 = arith.addf %16, %25 : vector<128x128xf32>
    %c0_18 = arith.constant 0 : index
    %c0_19 = arith.constant 0 : index
    %c0_20 = arith.constant 0 : index
    %27 = vector.load %arg5[%c0_18, %c0_19, %c0_20] : memref<1x1x128xf32, #tpu.memory_space<vmem>>, vector<1x1x128xf32>
    %28 = vector.shape_cast %27 : vector<1x1x128xf32> to vector<1x128xf32>
    %29 = vector.broadcast %28 : vector<1x128xf32> to vector<128x128xf32>
    %30 = arith.mulf %26, %29 : vector<128x128xf32>
    %c0_21 = arith.constant 0 : index
    %c0_22 = arith.constant 0 : index
    %c0_23 = arith.constant 0 : index
    %31 = vector.load %arg6[%c0_21, %c0_22, %c0_23] : memref<1x1x128xf32, #tpu.memory_space<vmem>>, vector<1x1x128xf32>
    %32 = vector.shape_cast %31 : vector<1x1x128xf32> to vector<1x128xf32>
    %33 = vector.broadcast %32 : vector<1x128xf32> to vector<128x128xf32>
    %34 = arith.addf %30, %33 : vector<128x128xf32>
    %c4_i32 = arith.constant 4 : i32
    %35 = arith.cmpi ne, %arg0, %c4_i32 : i32
    %36 = arith.extui %35 : i1 to i32
    %c0_i32_24 = arith.constant 0 : i32
    %37 = arith.cmpi ne, %36, %c0_i32_24 : i32
    scf.if %37 {
      %cst_27 = arith.constant 0.000000e+00 : f32
      %41 = vector.broadcast %cst_27 : f32 to vector<128x128xf32>
      %42 = arith.maximumf %34, %41 : vector<128x128xf32>
      %c0_28 = arith.constant 0 : index
      %c0_29 = arith.constant 0 : index
      %43 = vector.load %arg13[%c0_28, %c0_29] : memref<128x128xf32, #tpu.memory_space<vmem>>, vector<128x128xf32>
      tpu.vector_store %arg13[%c0_28, %c0_29], %42 {strides = array<i32>} : memref<128x128xf32, #tpu.memory_space<vmem>>, vector<128x128xf32>,
    } else {
    }
    %c4_i32_25 = arith.constant 4 : i32
    %38 = arith.cmpi eq, %arg0, %c4_i32_25 : i32
    %39 = arith.extui %38 : i1 to i32
    %c0_i32_26 = arith.constant 0 : i32
    %40 = arith.cmpi ne, %39, %c0_i32_26 : i32
    scf.if %40 {
      %c0_27 = arith.constant 0 : index
      %c0_28 = arith.constant 0 : index
      %41 = vector.load %arg9[%c0_27, %c0_28] : memref<8x128xbf16, #tpu.memory_space<vmem>>, vector<8x128xbf16>
      %42 = arith.truncf %34 : vector<128x128xf32> to vector<128x128xbf16>
      %cst_29 = arith.constant dense<0.000000e+00> : vector<8x128xf32>
      %43 = tpu.matmul %41, %42, %cst_29 {dimension_numbers = #tpu.dot_dimension_numbers<[1], [0], [0], [1], [0, 0, 1, 1], [], []>} : vector<8x128xbf16>, vector<128x128xbf16>, vector<8x128xf32> -> vector<8x128xf32>
      %44 = arith.truncf %43 : vector<8x128xf32> to vector<8x128xbf16>
      %c0_30 = arith.constant 0 : index
      %c0_31 = arith.constant 0 : index
      %45 = vector.load %arg10[%c0_30, %c0_31] : memref<128x128xbf16, #tpu.memory_space<vmem>>, vector<128x128xbf16>
      %cst_32 = arith.constant dense<0.000000e+00> : vector<8x128xf32>
      %46 = tpu.matmul %44, %45, %cst_32 {dimension_numbers = #tpu.dot_dimension_numbers<[1], [0], [0], [1], [0, 0, 1, 1], [], []>} : vector<8x128xbf16>, vector<128x128xbf16>, vector<8x128xf32> -> vector<8x128xf32>
      %c0_33 = arith.constant 0 : index
      %c0_34 = arith.constant 0 : index
      %47 = vector.load %arg11[%c0_33, %c0_34] : memref<1x128xf32, #tpu.memory_space<vmem>>, vector<1x128xf32>
      %48 = vector.broadcast %47 : vector<1x128xf32> to vector<8x128xf32>
      %49 = arith.addf %46, %48 : vector<8x128xf32>
      %c0_35 = arith.constant 0 : index
      %c0_36 = arith.constant 0 : index
      %50 = vector.load %arg12[%c0_35, %c0_36] : memref<8x128xf32, #tpu.memory_space<vmem>>, vector<8x128xf32>
      tpu.vector_store %arg12[%c0_35, %c0_36], %49 {strides = array<i32>} : memref<8x128xf32, #tpu.memory_space<vmem>>, vector<8x128xf32>,
    } else {
    }
    return
  }
  func.func @transform_0(%arg0: i32) -> (i32, i32) {
    %c0_i32 = arith.constant 0 : i32
    %c0_i32_0 = arith.constant 0 : i32
    %c0_i32_1 = arith.constant 0 : i32
    return %c0_i32, %c0_i32_0 : i32, i32
  }
  func.func @transform_1(%arg0: i32) -> (i32, i32, i32) {
    %c0_i32 = arith.constant 0 : i32
    %c0_i32_0 = arith.constant 0 : i32
    %c0_i32_1 = arith.constant 0 : i32
    return %arg0, %c0_i32, %c0_i32_0 : i32, i32, i32
  }
  func.func @transform_2(%arg0: i32) -> (i32, i32, i32) {
    %c0_i32 = arith.constant 0 : i32
    %c0_i32_0 = arith.constant 0 : i32
    %c0_i32_1 = arith.constant 0 : i32
    return %arg0, %c0_i32, %c0_i32_0 : i32, i32, i32
  }
  func.func @transform_3(%arg0: i32) -> (i32, i32, i32) {
    %c0_i32 = arith.constant 0 : i32
    %c0_i32_0 = arith.constant 0 : i32
    %c0_i32_1 = arith.constant 0 : i32
    return %arg0, %c0_i32, %c0_i32_0 : i32, i32, i32
  }
  func.func @transform_4(%arg0: i32) -> (i32, i32, i32) {
    %c0_i32 = arith.constant 0 : i32
    %c0_i32_0 = arith.constant 0 : i32
    %c0_i32_1 = arith.constant 0 : i32
    return %arg0, %c0_i32, %c0_i32_0 : i32, i32, i32
  }
  func.func @transform_5(%arg0: i32) -> (i32, i32, i32) {
    %c0_i32 = arith.constant 0 : i32
    %c0_i32_0 = arith.constant 0 : i32
    %c0_i32_1 = arith.constant 0 : i32
    return %arg0, %c0_i32, %c0_i32_0 : i32, i32, i32
  }
  func.func @transform_6(%arg0: i32) -> (i32, i32) {
    %c0_i32 = arith.constant 0 : i32
    %c0_i32_0 = arith.constant 0 : i32
    %c0_i32_1 = arith.constant 0 : i32
    return %c0_i32, %c0_i32_0 : i32, i32
  }
  func.func @transform_7(%arg0: i32) -> (i32, i32) {
    %c0_i32 = arith.constant 0 : i32
    %c0_i32_0 = arith.constant 0 : i32
    %c0_i32_1 = arith.constant 0 : i32
    return %c0_i32, %c0_i32_0 : i32, i32
  }
  func.func @transform_8(%arg0: i32) -> (i32, i32) {
    %c0_i32 = arith.constant 0 : i32
    %c0_i32_0 = arith.constant 0 : i32
    %c0_i32_1 = arith.constant 0 : i32
    return %c0_i32, %c0_i32_0 : i32, i32
  }
  func.func @transform_9(%arg0: i32) -> (i32, i32) {
    %c0_i32 = arith.constant 0 : i32
    %c0_i32_0 = arith.constant 0 : i32
    %c0_i32_1 = arith.constant 0 : i32
    return %c0_i32, %c0_i32_0 : i32, i32
  }
  func.func @transform_10(%arg0: i32) -> (i32, i32) {
    %c0_i32 = arith.constant 0 : i32
    %c0_i32_0 = arith.constant 0 : i32
    %c0_i32_1 = arith.constant 0 : i32
    return %c0_i32, %c0_i32_0 : i32, i32
  }
  func.func @transform_11(%arg0: i32) -> (i32, i32) {
    %c0_i32 = arith.constant 0 : i32
    %c0_i32_0 = arith.constant 0 : i32
    %c0_i32_1 = arith.constant 0 : i32
    return %c0_i32, %c0_i32_0 : i32, i32
  }
}

</mosaic_0001>

<bundles_post_ra>
// kernel: tpu_custom_call.1
= control target key start
LH: loop header
LB: loop body
LE: loop exit
PB: predicated region body
PF: predicated region fallthrough
CT: control target
= control target key end

     0   :  { %s2552_s0 = inlined_call_operand.vmem [shape: f32[128,128], index: 0, kind: input, shape index: {}]   ;;  %s2553_s1 = inlined_call_operand.hbm [shape: bf16[5,128,128], index: 1, kind: input, shape index: {}]   ;;  %s2554_s2 = inlined_call_operand.hbm [shape: f32[5,1,128], index: 2, kind: input, shape index: {}]   ;;  %s2555_s3 = inlined_call_operand.vmem [shape: f32[5,1,128], index: 3, kind: input, shape index: {}]   ;;  %s2556_s4 = inlined_call_operand.hbm [shape: f32[5,1,128], index: 4, kind: input, shape index: {}]   ;;  %s2557_s5 = inlined_call_operand.vmem [shape: f32[5,1,128], index: 5, kind: input, shape index: {}]   ;;  %s2558_s6 = inlined_call_operand.hbm [shape: bf16[128,128], index: 6, kind: input, shape index: {}]   ;;  %s2559_s7 = inlined_call_operand.vmem [shape: f32[128,1], index: 7, kind: input, shape index: {}]   ;;  %s2560_s8 = inlined_call_operand.vmem [shape: bf16[8,128], index: 8, kind: input, shape index: {}]   ;;  %s2561_s9 = inlined_call_operand.hbm [shape: bf16[128,128], index: 9, kind: input, shape index: {}]   ;;  %s2562_s10 = inlined_call_operand.vmem [shape: f32[1,128], index: 10, kind: input, shape index: {}]   ;;  %s2563_s11 = inlined_call_operand.hbm [shape: f32[8,128], index: 11, kind: output, shape index: {}]  }
   0x1   :  { %2578 = sst [smem:[#allocation20_spill]] %s2553_s1 }
   0x2   :  { %2579 = sst [smem:[#allocation21_spill]] %s2554_s2 }
   0x3   :  { %2580 = sst [smem:[#allocation22_spill]] %s2558_s6 }
   0x4   :  { %2581 = sst [smem:[#allocation23_spill]] %s2560_s8 }
   0x5   :  { %2582 = sst [smem:[#allocation24_spill]] %s2561_s9 }
   0x6   :  { %2583 = sst [smem:[#allocation25_spill]] %s2562_s10 }
   0x7   :  { %2584 = sst [smem:[#allocation26_spill]] %s2563_s11 }
   0x8   :  { %16 = vsyncpa [#allocation4], 0 }
   0x9   :  { %18 = vsyncpa [#allocation4 + $0x1], 0 }
   0xa   :  { %19 = vsyncpa [#allocation7], 0 }
   0xb   :  { %21 = vsyncpa [#allocation7 + $0x1], 0 }
   0xc   :  { %22 = vsyncpa [#allocation10], 0 }
   0xd   :  { %23 = vsyncpa [#allocation5], 0  ;;  %s2051_s17 = smov 0   ;;  %s2053_s18 = smov 0  }
   0xe   :  { %s2055_s19 = smov 0   ;;  %s2057_s20 = smov 0  }
   0xf LB: > { %2585 = sst [smem:[#allocation17_spill]] %s1974_s19  ;;  %s2070_s21 = sadd.s32 4294967295, %s1978_s20   ;;  %s1978_s20 = sphi %s2057_s20, %s2610_s20   ;;  %s1974_s19 = sphi %s2055_s19, %s2612_s19   ;;  %s1970_s18 = sphi %s2053_s18, %s2614_s18   ;;  %s1966_s17 = sphi %s2051_s17, %s2613_s17  }
  0x10   : > { %p70_p0 = scmp.ne.s32.totalorder %s1970_s18, %s1966_s17  ;;  %p2570_p1 = scmp.eq.s32.totalorder %s2070_s21, 0 }
  0x11   : > { %p1460_p2 = scmp.ge.s32.totalorder %s1978_s20, 1  ;;  %p311_p3 = scmp.lt.s32.totalorder %s1978_s20, 6 }
  0x12   : > { %p2079_p5 = por %p2570_p1, %p70_p0  ;;  %s1980_s24 = smov [#allocation9]  }
  0x13   : > { %p2083_p6 = pnand %p1460_p2, %p311_p3  ;;  %s326_s25 = sshll.u32 %s1980_s24, 4  ;;  %s327_s25 = int_to_ptr.vmem [resolvable:$true] %s326_s25 }
  0x14   : > { %s2586_s22 = scalar_select %p2079_p5, 1, 0 }
  0x15   : > { %s2587_s23 = scalar_select %p2083_p6, 1, 0 }
  0x16   : > { %p1682_p7 = pneg %p2083_p6  ;;  %s2096_s27 = sadd.s32 1, %s1978_s20  }
  0x17   : > { %2589 = sst [smem:[#allocation18_spill]] %s2096_s27  ;;  %s57_s28 = sadd.s32 1, %s1974_s19 }
  0x18   : > { %p2091_p8 = pnand %p1682_p7, %p2570_p1  ;;  %s54_s29 = ssub.s32 %s1978_s20, %s2096_s27 }
  0x19   : > { %s1783_s30 = scalar_lea.vmem %s327_s25, 1024  ;;  %p1791_p13 = scmp.lt.s32.totalorder %s327_s25, %s327_s25 }
  0x1a   : > { %s2588_s26 = scalar_select %p2091_p8, 1, 0 }
  0x1b   : > { %p2571_p9 = pneg %p2091_p8  ;;  %p1784_p10 = scmp.ne.s32.totalorder %s327_s25, %s1783_s30 }
  0x1c   : > { %p1792_p0 = scmp.lt.s32.totalorder %s1783_s30, %s1783_s30 }
  0x1d   : > { %p1786_p11 = pnand %p1784_p10, %p2571_p9 }
  0x1e   : > { %p1793_p2 = por %p1792_p0, %p1791_p13 }
  0x1f   : > { %p1787_p12 = pneg %p1786_p11 }
  0x21   : > { %p1794_p3 = pnand %p1793_p2, %p1787_p12 }
  0x23   : > { %1797 = shalt.err (!%p1794_p3)
}
  0x24   : > { %s2566_s12 = smov 64   ;;  %s2568_s13 = smov 4  }
  0x25   : > { %s2590_s6 = sld [smem:[#allocation22_spill]]  ;;  %p55_p7 = scmp.eq.s32.totalorder %s54_s29, 0 }
  0x26   : > { %p64_p10 = scmp.ne.s32.totalorder %s1974_s19, %s1970_s18  ;;  %p65_p11 = scmp.eq.s32.totalorder %s1978_s20, 0 }
  0x27   : > { %p1701_p12 = scmp.lt.s32.totalorder %s1978_s20, 5  ;;  %s2122_s17 = sand.u32 1, %s1974_s19  }
  0x28   : > { %s2119_s16 = scalar_select %p55_p7, %s1974_s19, %s57_s28  }
  0x29   : > { %p66_p13 = por %p65_p11, %p64_p10  ;;  %s383_s24 = sand.u32 1, %s1978_s20  }
  0x2a   : > { %2591 = sst [smem:[#allocation19_spill]] %s2119_s16  ;;  %s2573_s27 = sshll.u32 %s1978_s20, 4 }
  0x2b   : > { %1685 = dma.hbm_to_vmem [thread:$0]  (!%p2091_p8), %s2590_s6, 1024, %s327_s25, [#allocation10], %s2566_s12, %s2566_s12, %s2568_s13  }
  0x2c   : > { %p2125_p0 = pnand %p1701_p12, %p66_p13  ;;  %s386_s11 = scalar_lea.vmem [#allocation6], %s2122_s17 }
  0x2d   : > { %s393_s14 = sshll.u32 %s386_s11, 4  ;;  %s2593_s2 = sld [smem:[#allocation21_spill]]  ;;  %s394_s14 = int_to_ptr.vmem [resolvable:$true] %s393_s14 }
  0x2e   : > { %s2136_s28 = scalar_lea.sflag [#allocation7], %s383_s24  ;;  %p2140_p3 = pneg %p2125_p0 }
  0x33   : > { %s391_s15 = scalar_lea.hbm %s2593_s2, %s2573_s27  ;;  %s1803_s16 = scalar_lea.hbm %s2593_s2, 80 }
  0x34   : > { %s1798_s12 = scalar_lea.hbm %s391_s15, 16  ;;  %p1804_p11 = scmp.lt.s32.totalorder %s391_s15, %s2593_s2 }
  0x35   : > { %p1799_p2 = scmp.ne.s32.totalorder %s391_s15, %s1798_s12  ;;  %p1805_p12 = scmp.lt.s32.totalorder %s1803_s16, %s1798_s12 }
  0x37   : > { %p1801_p7 = pnand %p2140_p3, %p1799_p2  ;;  %p1806_p13 = por %p1805_p12, %p1804_p11 }
  0x39   : > { %p1802_p10 = pneg %p1801_p7 }
  0x3b   : > { %p1807_p4 = pnand %p1806_p13, %p1802_p10 }
  0x3d   : > { %1810 = shalt.err (!%p1807_p4)
}
  0x3e   : > { %s1811_s24 = scalar_lea.vmem %s394_s14, 16  ;;  %s1983_s27 = smov [#allocation6]  }
  0x3f   : > { %p1812_p1 = scmp.ne.s32.totalorder %s394_s14, %s1811_s24  ;;  %s1816_s19 = sshll.u32 %s1983_s27, 4  ;;  %s1817_s19 = int_to_ptr.vmem [resolvable:$false] %s1816_s19 }
  0x40   : > { %s1818_s10 = scalar_lea.vmem %s1817_s19, 32  ;;  %p1819_p2 = scmp.lt.s32.totalorder %s394_s14, %s1817_s19 }
  0x41   : > { %p1814_p9 = pnand %p1812_p1, %p2140_p3  ;;  %p1820_p7 = scmp.lt.s32.totalorder %s1818_s10, %s1811_s24 }
  0x43   : > { %p1815_p5 = pneg %p1814_p9  ;;  %p1821_p6 = por %p1820_p7, %p1819_p2 }
  0x45   : > { %p1822_p8 = pnand %p1821_p6, %p1815_p5 }
  0x47   : > { %1825 = shalt.err (!%p1822_p8)
}
  0x48   : > { %1695 = dma.hbm_to_vmem [thread:$0]  (!%p2125_p0), %s391_s15, 16, %s394_s14, %s2136_s28  }
  0x49   : > { %s1984_s6 = smov [#allocation11]   ;;  %s1464_s16 = sshll.u32 %s2122_s17, 6 }
  0x4a   : > { %s345_s12 = sshll.u32 %s1984_s6, 4  ;;  %p2595_p4 = scmp.ne.s32.totalorder %s2588_s26, 0  ;;  %s346_s12 = int_to_ptr.vmem [resolvable:$true] %s345_s12 }
  0x4b   : > { %s1837_s11 = scalar_lea.vmem %s346_s12, 1024  ;;  %p1845_p12 = scmp.lt.s32.totalorder %s346_s12, %s346_s12 }
  0x4c   : > { %p1838_p1 = scmp.ne.s32.totalorder %s346_s12, %s1837_s11  ;;  %p2596_p9 = pneg %p2595_p4 }
  0x4d   : > { %p1846_p13 = scmp.lt.s32.totalorder %s1837_s11, %s1837_s11 }
  0x4e   : > { %p1840_p10 = pnand %p1838_p1, %p2596_p9 }
  0x4f   : > { %p1847_p5 = por %p1846_p13, %p1845_p12 }
  0x50   : > { %p1841_p11 = pneg %p1840_p10 }
  0x52   : > { %p1848_p6 = pnand %p1847_p5, %p1841_p11 }
  0x54   : > { %1851 = shalt.err (!%p1848_p6)
}
  0x55   : > { %s2597_s10 = smov 4   ;;  %s2598_s19 = smov 64  }
  0x56   : > { %s2599_s9 = sld [smem:[#allocation24_spill]]  ;;  %s1509_s15 = sshll.u32 %s1978_s20, 10 }
  0x57   : > { %s366_s25 = scalar_lea.vmem [#allocation3], %s1464_s16  ;;  %s2600_s1 = sld [smem:[#allocation20_spill]] }
  0x58   : > { %s373_s29 = sshll.u32 %s366_s25, 4  ;;  %s363_s26 = scalar_lea.sflag [#allocation4], %s2122_s17  ;;  %s2175_s29 = int_to_ptr.vmem [resolvable:$true] %s373_s29 }
  0x5c   : > { %1688 = dma.hbm_to_vmem [thread:$0]  (!%p2595_p4), %s2599_s9, 1024, %s346_s12, [#allocation10], %s2598_s19, %s2598_s19, %s2597_s10  }
  0x5d   : > { %s2173_s11 = scalar_lea.hbm %s2600_s1, %s1509_s15  ;;  %s1857_s16 = scalar_lea.hbm %s2600_s1, 5120 }
  0x5e   : > { %s1852_s2 = scalar_lea.hbm %s2173_s11, 1024  ;;  %p1858_p1 = scmp.lt.s32.totalorder %s2173_s11, %s2600_s1 }
  0x5f   : > { %p1853_p8 = scmp.ne.s32.totalorder %s2173_s11, %s1852_s2  ;;  %p1859_p4 = scmp.lt.s32.totalorder %s1857_s16, %s1852_s2 }
  0x61   : > { %p1855_p2 = pnand %p1853_p8, %p2140_p3  ;;  %p1860_p9 = por %p1859_p4, %p1858_p1 }
  0x63   : > { %p1856_p7 = pneg %p1855_p2 }
  0x65   : > { %p1861_p10 = pnand %p1860_p9, %p1856_p7 }
  0x67   : > { %1864 = shalt.err (!%p1861_p10)
}
  0x68   : > { %s1865_s15 = scalar_lea.vmem %s2175_s29, 1024  ;;  %s1985_s24 = smov [#allocation3]  }
  0x69   : > { %p1866_p11 = scmp.ne.s32.totalorder %s2175_s29, %s1865_s15  ;;  %s1870_s6 = sshll.u32 %s1985_s24, 4  ;;  %s1871_s6 = int_to_ptr.vmem [resolvable:$false] %s1870_s6 }
  0x6a   : > { %s1872_s12 = scalar_lea.vmem %s1871_s6, 2048  ;;  %p1873_p5 = scmp.lt.s32.totalorder %s2175_s29, %s1871_s6 }
  0x6b   : > { %p1868_p12 = pnand %p1866_p11, %p2140_p3  ;;  %p1874_p6 = scmp.lt.s32.totalorder %s1872_s12, %s1865_s15 }
  0x6d   : > { %p1869_p13 = pneg %p1868_p12  ;;  %p1875_p8 = por %p1874_p6, %p1873_p5 }
  0x6f   : > { %p1876_p2 = pnand %p1875_p8, %p1869_p13 }
  0x71   : > { %1879 = shalt.err (!%p1876_p2)
}
  0x72   : > { %1692 = dma.hbm_to_vmem [thread:$0]  (!%p2125_p0), %s2173_s11, 1024, %s2175_s29, %s363_s26, %s2598_s19, %s2598_s19, %s2597_s10  }
  0x73   : > { %s2601_s2 = sshll.u32 %s1978_s20, 4  ;;  %s409_s25 = scalar_lea.vmem [#allocation8], %s2122_s17 }
  0x74   : > { %s414_s14 = scalar_lea.hbm %s2556_s4, %s2601_s2  ;;  %s416_s15 = sshll.u32 %s409_s25, 4  ;;  %s417_s15 = int_to_ptr.vmem [resolvable:$true] %s416_s15 }
  0x75   : > { %s1880_s24 = scalar_lea.hbm %s414_s14, 16  ;;  %s1885_s1 = scalar_lea.hbm %s2556_s4, 80 }
  0x76   : > { %p1881_p7 = scmp.ne.s32.totalorder %s414_s14, %s1880_s24  ;;  %p1886_p9 = scmp.lt.s32.totalorder %s414_s14, %s2556_s4 }
  0x77   : > { %p1887_p10 = scmp.lt.s32.totalorder %s1885_s1, %s1880_s24 }
  0x78   : > { %p1883_p1 = pnand %p1881_p7, %p2140_p3 }
  0x79   : > { %p1888_p11 = por %p1887_p10, %p1886_p9 }
  0x7a   : > { %p1884_p4 = pneg %p1883_p1 }
  0x7c   : > { %p1889_p12 = pnand %p1888_p11, %p1884_p4 }
  0x7e   : > { %1892 = shalt.err (!%p1889_p12)
}
  0x7f   : > { %s1893_s20 = scalar_lea.vmem %s417_s15, 16  ;;  %s1986_s17 = smov [#allocation8]  }
  0x80   : > { %p1894_p13 = scmp.ne.s32.totalorder %s417_s15, %s1893_s20  ;;  %s1898_s10 = sshll.u32 %s1986_s17, 4  ;;  %s1899_s10 = int_to_ptr.vmem [resolvable:$false] %s1898_s10 }
  0x81   : > { %s1900_s19 = scalar_lea.vmem %s1899_s10, 32  ;;  %p1901_p8 = scmp.lt.s32.totalorder %s417_s15, %s1899_s10 }
  0x82   : > { %p1896_p5 = pnand %p1894_p13, %p2140_p3  ;;  %p1902_p2 = scmp.lt.s32.totalorder %s1900_s19, %s1893_s20 }
  0x84   : > { %p1897_p6 = pneg %p1896_p5  ;;  %p1903_p7 = por %p1902_p2, %p1901_p8 }
  0x86   : > { %p1904_p1 = pnand %p1903_p7, %p1897_p6 }
  0x88   : > { %1907 = shalt.err (!%p1904_p1)
}
  0x89   : > { %1698 = dma.hbm_to_vmem [thread:$0]  (!%p2125_p0), %s414_s14, 16, %s417_s15, %s2136_s28  }
  0x8a   : > { %p2602_p4 = scmp.ne.s32.totalorder %s2587_s23, 0 }
  0x8b   : > { %s2223_s1 = sand.u32 (!%p2602_p4), 1, %s1970_s18   ;;  %p2603_p3 = scmp.ne.s32.totalorder (!%p2602_p4), %s2586_s22, 0 }
  0x8c   : > { %431 = sbr.rel (%p2602_p4) target bundleno = 1155 (0x483), region = 64  ;;  %s1470_s8 = sshll.u32 (!%p2602_p4), %s2223_s1, 6 }
  0x8d   : > { %s434_s9 = scalar_lea.sflag (!%p2602_p4), [#allocation4], %s2223_s1  ;;  %s2227_s13 = scalar_lea.vmem (!%p2602_p4), [#allocation3], %s1470_s8 }
  0x91   : > { %1949 = dma.done.wait (%p2603_p3), %s434_s9, 1024  }
  0x92   : > { %1951 = vsyncadd (%p2603_p3), %s434_s9, 4294966272  ;;  %s442_s23 = sand.u32 1, %s2070_s21   ;;  %s445_s28 = scalar_lea.vmem [#allocation6], %s2223_s1 }
  0x93   : > { %s443_s30 = scalar_lea.sflag [#allocation7], %s442_s23 }
  0x94   : > { %1953 = dma.done.wait (%p2603_p3), %s443_s30, 32  }
  0x95   : > { %1955 = vsyncadd (%p2603_p3), %s443_s30, 4294967264  ;;  %s453_s29 = scalar_lea.vmem [#allocation8], %s2223_s1  ;;  %p2604_p0 = scmp.eq.s32.totalorder %s2070_s21, 0 }
  0x97   : > { %1957 = dma.done.wait (%p2604_p0), [#allocation10], 2048   ;;  %p2605_p9 = pmov %p2604_p0 }
  0x98   : > { %p509_p10 = scmp.lt.s32.totalorder %s2070_s21, 4  ;;  %p2606_p11 = scmp.ne.s32.totalorder %s2070_s21, 0 }
  0x99   : > { %1959 = vsyncadd (%p2605_p9), [#allocation10], 4294965248 }
  0x9a   : > { %s2246_s11 = scalar_select %p509_p10, %s2070_s21, 4 }
  0x9b   : > { %519 = sbr.rel (%p2606_p11) target bundleno = 169 (0xa9), region = 88 }
  0x9c   : > { %s511_s22 = scalar_lea.vmem %s2555_s3, %s2246_s11  ;;  %s514_s14 = scalar_lea.vmem %s2557_s5, %s2246_s11 }
  0xa0   : > { %v520_v0 = vld [vmem:[%s2552_s0] sm:$0xff]  ;;  %v521_v1 = vld [vmem:[%s2552_s0 + $0x8] sm:$0xff]  ;;  %v522_v2 = vld [vmem:[%s2552_s0 + $0x10] sm:$0xff] }
  0xa1   : > { %536 = vst [vmem:[#allocation2 + $0x30] sm:$0xff] %v520_v0  ;;  %537 = vst [vmem:[#allocation2] sm:$0xff] %v521_v1  ;;  %v523_v3 = vld [vmem:[%s2552_s0 + $0x18] sm:$0xff]  ;;  %v524_v4 = vld [vmem:[%s2552_s0 + $0x20] sm:$0xff] }
  0xa2   : > { %538 = vst [vmem:[#allocation2 + $0x58] sm:$0xff] %v522_v2  ;;  %v525_v5 = vld [vmem:[%s2552_s0 + $0x28] sm:$0xff]  ;;  %539 = vst [vmem:[#allocation2 + $0x18] sm:$0xff] %v523_v3  ;;  %v526_v6 = vld [vmem:[%s2552_s0 + $0x30] sm:$0xff] }
  0xa3   : > { %540 = vst [vmem:[#allocation2 + $0x50] sm:$0xff] %v524_v4  ;;  %541 = vst [vmem:[#allocation2 + $0x68] sm:$0xff] %v525_v5  ;;  %v527_v7 = vld [vmem:[%s2552_s0 + $0x38] sm:$0xff]  ;;  %v528_v8 = vld [vmem:[%s2552_s0 + $0x40] sm:$0xff] }
  0xa4   : > { %542 = vst [vmem:[#allocation2 + $0x8] sm:$0xff] %v526_v6  ;;  %543 = vst [vmem:[#allocation2 + $0x48] sm:$0xff] %v527_v7  ;;  %v529_v9 = vld [vmem:[%s2552_s0 + $0x48] sm:$0xff]  ;;  %v530_v10 = vld [vmem:[%s2552_s0 + $0x50] sm:$0xff] }
  0xa5   : > { %544 = vst [vmem:[#allocation2 + $0x40] sm:$0xff] %v528_v8  ;;  %v531_v11 = vld [vmem:[%s2552_s0 + $0x58] sm:$0xff]  ;;  %545 = vst [vmem:[#allocation2 + $0x20] sm:$0xff] %v529_v9  ;;  %v532_v12 = vld [vmem:[%s2552_s0 + $0x60] sm:$0xff] }
  0xa6   : > { %546 = vst [vmem:[#allocation2 + $0x10] sm:$0xff] %v530_v10  ;;  %547 = vst [vmem:[#allocation2 + $0x38] sm:$0xff] %v531_v11  ;;  %v533_v13 = vld [vmem:[%s2552_s0 + $0x68] sm:$0xff]  ;;  %v534_v14 = vld [vmem:[%s2552_s0 + $0x70] sm:$0xff] }
  0xa7   : > { %548 = vst [vmem:[#allocation2 + $0x60] sm:$0xff] %v532_v12  ;;  %549 = vst [vmem:[#allocation2 + $0x70] sm:$0xff] %v533_v13  ;;  %v535_v15 = vld [vmem:[%s2552_s0 + $0x78] sm:$0xff] }
  0xa8   : > { %550 = vst [vmem:[#allocation2 + $0x78] sm:$0xff] %v534_v14  ;;  %551 = vst [vmem:[#allocation2 + $0x28] sm:$0xff] %v535_v15 }
  0xa9 PF: > { %v1748_v16 = vld [vmem:[%s2227_s13 + $0x38] sm:$0xff]   ;;  %v1749_v17 = vld [vmem:[%s2227_s13 + $0x30] sm:$0xff]   ;;  %v1987_v18 = vmov 0   ;;  %v1750_v19 = vld [vmem:[%s2227_s13 + $0x28] sm:$0xff]   ;;  %p1494_p12 = scmp.eq.s32.totalorder %s2070_s21, 4 }
  0xaa   : > { %1746 = vset.pattern.permute.xlu0 %v1987_v18  ;;  %1747 = vset.pattern.permute.xlu1 %v1987_v18  ;;  %v1751_v20 = vld [vmem:[%s2227_s13 + $0x20] sm:$0xff]   ;;  %v552_v21 = vld [vmem:[#allocation2 + $0x30] sm:$0xff]  ;;  %v1752_v24 = vld [vmem:[%s2227_s13 + $0x18] sm:$0xff]  }
  0xab   : > { %1560 = vmatprep.subr.bf16.mxu0 %v1748_v16  ;;  %v553_v22 = vld [vmem:[#allocation2] sm:$0xff]  ;;  %v825_v26 = vld [vmem:[%s2559_s7 + $0x10] sm:$0xff]  ;;  %v824_v27 = vld [vmem:[%s2559_s7 + $0x8] sm:$0xff] }
  0xac   : > { %1561 = vmatpush3.bf16.msra.mxu0 %v1748_v16  ;;  %v568_v23 = vpack.c.bf16 %v553_v22, %v552_v21  ;;  %v823_v25 = vld [vmem:[%s2559_s7] sm:$0xff]  ;;  %851 = vperm.xlu1 %1747, %v825_v26   ;;  %v826_v28 = vld [vmem:[%s2559_s7 + $0x18] sm:$0xff]  ;;  %v1753_v29 = vld [vmem:[%s2227_s13 + $0x10] sm:$0xff]  }
  0xad   : > { %1562 = vmatprep.subr.bf16.mxu0 %v1749_v17  ;;  %841 = vperm.xlu0 %1746, %v823_v25   ;;  %v1754_v30 = vld [vmem:[%s2227_s13 + $0x8] sm:$0xff]   ;;  %v827_v31 = vld [vmem:[%s2559_s7 + $0x20] sm:$0xff]  ;;  %v829_v33 = vld [vmem:[%s2559_s7 + $0x30] sm:$0xff] }
  0xae   : > { %1576 = vmatprep.mubr.bf16.mxu0 %v568_v23  ;;  %v828_v32 = vld [vmem:[%s2559_s7 + $0x28] sm:$0xff]  ;;  %v830_v34 = vld [vmem:[%s2559_s7 + $0x38] sm:$0xff]  ;;  %v1755_v35 = vld [vmem:[%s2227_s13] sm:$0xff]  }
  0xaf   : > { %v554_v36 = vld [vmem:[#allocation2 + $0x58] sm:$0xff]  ;;  %v831_v38 = vld [vmem:[%s2559_s7 + $0x40] sm:$0xff]  ;;  %v832_v39 = vld [vmem:[%s2559_s7 + $0x48] sm:$0xff] }
  0xb0   : > { %1563 = vmatpush3.bf16.msra.mxu0 %v1749_v17  ;;  %856 = vperm.xlu1 %1747, %v826_v28   ;;  %v555_v37 = vld [vmem:[#allocation2 + $0x18] sm:$0xff]  ;;  %v556_v40 = vld [vmem:[#allocation2 + $0x50] sm:$0xff]  ;;  %v557_v41 = vld [vmem:[#allocation2 + $0x68] sm:$0xff] }
  0xb1   : > { %1564 = vmatprep.subr.bf16.mxu0 %v1750_v19  ;;  %846 = vperm.xlu0 %1746, %v824_v27   ;;  %v569_v42 = vpack.c.bf16 %v555_v37, %v554_v36  ;;  %v570_v43 = vpack.c.bf16 %v557_v41, %v556_v40  ;;  %v833_v44 = vld [vmem:[%s2559_s7 + $0x50] sm:$0xff]  ;;  %v834_v45 = vld [vmem:[%s2559_s7 + $0x58] sm:$0xff]  ;;  %v558_v46 = vld [vmem:[#allocation2 + $0x8] sm:$0xff] }
  0xb2   : > { %v559_v47 = vld [vmem:[#allocation2 + $0x48] sm:$0xff]  ;;  %v835_v48 = vld [vmem:[%s2559_s7 + $0x60] sm:$0xff]  ;;  %v837_v54 = vld [vmem:[%s2559_s7 + $0x70] sm:$0xff] }
  0xb3   : > { %v560_v49 = vld [vmem:[#allocation2 + $0x40] sm:$0xff]  ;;  %v836_v51 = vld [vmem:[%s2559_s7 + $0x68] sm:$0xff]  ;;  %v571_v52 = vpack.c.bf16 %v559_v47, %v558_v46  ;;  %v838_v55 = vld [vmem:[%s2559_s7 + $0x78] sm:$0xff] }
  0xb4   : > { %1565 = vmatpush3.bf16.msra.mxu0 %v1750_v19  ;;  %866 = vperm.xlu1 %1747, %v828_v32   ;;  %v561_v50 = vld [vmem:[#allocation2 + $0x20] sm:$0xff]  ;;  %v562_v56 = vld [vmem:[#allocation2 + $0x10] sm:$0xff]  ;;  %v563_v57 = vld [vmem:[#allocation2 + $0x38] sm:$0xff] }
  0xb5   : > { %1566 = vmatprep.subr.bf16.mxu0 %v1751_v20  ;;  %861 = vperm.xlu0 %1746, %v827_v31   ;;  %v572_v53 = vpack.c.bf16 %v561_v50, %v560_v49  ;;  %v564_v58 = vld [vmem:[#allocation2 + $0x60] sm:$0xff]  ;;  %v565_v59 = vld [vmem:[#allocation2 + $0x70] sm:$0xff]  ;;  %v573_v60 = vpack.c.bf16 %v563_v57, %v562_v56  ;;  %v566_v62 = vld [vmem:[#allocation2 + $0x78] sm:$0xff] }
  0xb6   : > { %v574_v61 = vpack.c.bf16 %v565_v59, %v564_v58  ;;  %v567_v63 = vld [vmem:[#allocation2 + $0x28] sm:$0xff]  ;;  %v1474_v15 = vld [vmem:[%s445_s28] ss:$0 sm:$0xff] }
  0xb7   : > { %v575_v0 = vpack.c.bf16 %v567_v63, %v566_v62  ;;  %v1756_v1 = vld [vmem:[#allocation9] sm:$0xff]   ;;  %v1757_v59 = vld [vmem:[#allocation9 + $0x8] sm:$0xff]  }
  0xb8   : > { %1567 = vmatpush3.bf16.msra.mxu0 %v1751_v20  ;;  %876 = vperm.xlu1 %1747, %v830_v34   ;;  %v1760_v62 = vld [vmem:[#allocation9 + $0x20] sm:$0xff]   ;;  %v1761_v63 = vld [vmem:[#allocation9 + $0x28] sm:$0xff]  }
  0xb9   : > { %1568 = vmatprep.subr.bf16.mxu0 %v1752_v24  ;;  %871 = vperm.xlu0 %1746, %v829_v33  }
  0xba   : > { %1608 = vmatprep.mubr.bf16.mxu1 %v1756_v1  ;;  %v1763_v1 = vld [vmem:[#allocation9 + $0x38] sm:$0xff]  }
  0xbc   : > { %1569 = vmatpush3.bf16.msra.mxu0 %v1752_v24  ;;  %886 = vperm.xlu1 %1747, %v832_v39  }
  0xbd   : > { %1570 = vmatprep.subr.bf16.mxu0 %v1753_v29  ;;  %881 = vperm.xlu0 %1746, %v831_v38  }
  0xc0   : > { %1571 = vmatpush3.bf16.msra.mxu0 %v1753_v29  ;;  %896 = vperm.xlu1 %1747, %v834_v45  }
  0xc1   : > { %1572 = vmatprep.subr.bf16.mxu0 %v1754_v30  ;;  %891 = vperm.xlu0 %1746, %v833_v44  }
  0xc4   : > { %1573 = vmatpush3.bf16.msra.mxu0 %v1754_v30  ;;  %906 = vperm.xlu1 %1747, %v836_v51  }
  0xc5   : > { %1574 = vmatprep.subr.bf16.mxu0 %v1755_v35  ;;  %901 = vperm.xlu0 %1746, %v835_v48  }
  0xc8   : > { %1575 = vmatpush3.bf16.msra.mxu0 %v1755_v35  ;;  %916 = vperm.xlu1 %1747, %v838_v55  }
  0xc9   : > { %911 = vperm.xlu0 %1746, %v837_v54  }
  0xcb   : > { %1577 = vmatmul.mubr.bf16.vlgmr.msra.gmra.mxu0 %v569_v42 }
  0xcc   : > { %1580 = vmatprep.mubr.bf16.mxu0 %v570_v43 }
  0xd3   : > { %1581 = vmatmul.mubr.bf16.gmra.mxu0 %v571_v52 }
  0xd4   : > { %1584 = vmatprep.mubr.bf16.mxu0 %v572_v53 }
  0xdb   : > { %1585 = vmatmul.mubr.bf16.gmra.mxu0 %v573_v60  ;;  %v1758_v60 = vld [vmem:[#allocation9 + $0x10] sm:$0xff]  }
  0xdc   : > { %1588 = vmatprep.mubr.bf16.mxu0 %v574_v61  ;;  %v1759_v61 = vld [vmem:[#allocation9 + $0x18] sm:$0xff]  }
  0xe3   : > { %1589 = vmatmul.mubr.bf16.gmra.mxu0 %v575_v0  ;;  %v1762_v0 = vld [vmem:[#allocation9 + $0x30] sm:$0xff]  }
 0x18b   : > { %v1578_v2 = vpop.f32.mrf.mxu0 }
 0x18c   : > { %v690_v48 = vadd.f32 %v1578_v2, %v1474_v15  ;;  %v842_v2 = vpop.permute.xlu0 %841 }
 0x18d   : > { %v681_v3 = vpop.f32.mrf.mxu0 }
 0x18e   : > { %v746_v53 = vmax.f32 %v690_v48, 0.0  ;;  %v682_v54 = vadd.f32 %v1474_v15, %v681_v3  ;;  %v852_v3 = vpop.permute.xlu1 %851 }
 0x18f   : > { %v1579_v4 = vpop.f32.mrf.mxu0 }
 0x190   : > { %v693_v45 = vadd.f32 %v1579_v4, %v1474_v15  ;;  %v744_v57 = vmax.f32 %v682_v54, 0.0  ;;  %v847_v4 = vpop.permute.xlu0 %846 }
 0x191   : > { %v684_v5 = vpop.f32.mrf.mxu0 }
 0x192   : > { %v747_v50 = vmax.f32 %v693_v45, 0.0  ;;  %v685_v51 = vadd.f32 %v1474_v15, %v684_v5  ;;  %v2399_v5 = vld [vmem:[%s511_s22] ss:$0 sm:$0xff] }
 0x193   : > { %v1582_v6 = vpop.f32.mrf.mxu0 }
 0x194   : > { %v706_v38 = vadd.f32 %v1582_v6, %v1474_v15  ;;  %v745_v55 = vmax.f32 %v685_v51, 0.0  ;;  %v761_v56 = vpack.c.bf16 %v747_v50, %v746_v53  ;;  %v857_v6 = vpop.permute.xlu1 %856 }
 0x195   : > { %v697_v7 = vpop.f32.mrf.mxu0 }
 0x196   : > { %v750_v43 = vmax.f32 %v706_v38, 0.0  ;;  %v698_v44 = vadd.f32 %v1474_v15, %v697_v7  ;;  %v760_v58 = vpack.c.bf16 %v745_v55, %v744_v57  ;;  %v862_v7 = vpop.permute.xlu0 %861 }
 0x197   : > { %v1583_v8 = vpop.f32.mrf.mxu0 }
 0x198   : > { %v2386_v35 = vadd.f32 %v1583_v8, %v1474_v15  ;;  %v748_v49 = vmax.f32 %v698_v44, 0.0  ;;  %v793_v8 = vadd.f32 %v2399_v5, %v690_v48 }
 0x199   : > { %v700_v9 = vpop.f32.mrf.mxu0 }
 0x19a   : > { %v751_v40 = vmax.f32 %v2386_v35, 0.0  ;;  %v2391_v41 = vadd.f32 %v1474_v15, %v700_v9  ;;  %v791_v9 = vadd.f32 %v2399_v5, %v682_v54 }
 0x19b   : > { %v1586_v10 = vpop.f32.mrf.mxu0 }
 0x19c   : > { %v2376_v26 = vadd.f32 %v1586_v10, %v1474_v15  ;;  %v749_v46 = vmax.f32 %v2391_v41, 0.0  ;;  %v763_v47 = vpack.c.bf16 %v751_v40, %v750_v43  ;;  %v867_v10 = vpop.permute.xlu1 %866 }
 0x19d   : > { %v713_v11 = vpop.f32.mrf.mxu0 }
 0x19e   : > { %v754_v33 = vmax.f32 %v2376_v26, 0.0  ;;  %v2384_v34 = vadd.f32 %v1474_v15, %v713_v11  ;;  %v762_v52 = vpack.c.bf16 %v749_v46, %v748_v49  ;;  %v794_v11 = vadd.f32 %v2399_v5, %v693_v45 }
 0x19f   : > { %v1587_v12 = vpop.f32.mrf.mxu0  ;;  %v796_v45 = vadd.f32 %v2399_v5, %v2391_v41  ;;  %v801_v54 = vadd.f32 %v2399_v5, %v2376_v26 }
 0x1a0   : > { %v2370_v22 = vadd.f32 %v1587_v12, %v1474_v15  ;;  %v752_v39 = vmax.f32 %v2384_v34, 0.0  ;;  %v809_v12 = vmax.f32 %v793_v8, 0.0 }
 0x1a1   : > { %v716_v13 = vpop.f32.mrf.mxu0 }
 0x1a2   : > { %v755_v30 = vmax.f32 %v2370_v22, 0.0  ;;  %v2381_v31 = vadd.f32 %v1474_v15, %v716_v13  ;;  %v872_v13 = vpop.permute.xlu0 %871 }
 0x1a3   : > { %v1590_v14 = vpop.f32.mrf.mxu0 }
 0x1a4   : > { %v2364_v17 = vadd.f32 %v1590_v14, %v1474_v15  ;;  %v753_v36 = vmax.f32 %v2381_v31, 0.0  ;;  %v765_v37 = vpack.c.bf16 %v755_v30, %v754_v33  ;;  %v807_v14 = vmax.f32 %v791_v9, 0.0 }
 0x1a5   : > { %v729_v16 = vpop.f32.mrf.mxu0 }
 0x1a6   : > { %v2368_v20 = vadd.f32 %v1474_v15, %v729_v16  ;;  %v758_v23 = vmax.f32 %v2364_v17, 0.0  ;;  %v764_v42 = vpack.c.bf16 %v753_v36, %v752_v39  ;;  %v797_v16 = vadd.f32 %v2399_v5, %v706_v38  ;;  %v882_v30 = vpop.permute.xlu0 %881  ;;  %v2418_v38 = vld [vmem:[%s514_s14] ss:$0 sm:$0xff] }
 0x1a7   : > { %v1591_v18 = vpop.f32.mrf.mxu0  ;;  %v919_v33 = vmul.f32 %v842_v2, %v807_v14  ;;  %v798_v36 = vadd.f32 %v2399_v5, %v2386_v35 }
 0x1a8   : > { %v2366_v19 = vadd.f32 %v1591_v18, %v1474_v15  ;;  %v756_v28 = vmax.f32 %v2368_v20, 0.0  ;;  %v921_v18 = vmul.f32 %v852_v3, %v809_v12  ;;  %v817_v3 = vmax.f32 %v801_v54, 0.0 }
 0x1a9   : > { %v732_v21 = vpop.f32.mrf.mxu0 }
 0x1aa   : > { %v759_v24 = vmax.f32 %v2366_v19, 0.0  ;;  %v2374_v25 = vadd.f32 %v1474_v15, %v732_v21  ;;  %v792_v15 = vadd.f32 %v2399_v5, %v685_v51  ;;  %v810_v21 = vmax.f32 %v794_v11, 0.0  ;;  %v892_v55 = vpop.permute.xlu0 %891 }
 0x1ab   : > { %v814_v51 = vmax.f32 %v798_v36, 0.0 }
 0x1ac   : > { %v767_v27 = vpack.c.bf16 %v759_v24, %v758_v23  ;;  %v757_v29 = vmax.f32 %v2374_v25, 0.0  ;;  %v795_v23 = vadd.f32 %v2399_v5, %v698_v44  ;;  %v877_v24 = vpop.permute.xlu1 %876  ;;  %v922_v40 = vmul.f32 %v857_v6, %v810_v21 }
 0x1ad   : > { %v926_v26 = vmul.f32 %v877_v24, %v814_v51 }
 0x1ae   : > { %1592 = vmatprep.subr.bf16.mxu1 %v767_v27  ;;  %v766_v32 = vpack.c.bf16 %v757_v29, %v756_v28  ;;  %v2409_v28 = vld [vmem:[%s453_s29] ss:$0 sm:$0xff]  ;;  %v808_v29 = vmax.f32 %v792_v15, 0.0  ;;  %v811_v44 = vmax.f32 %v795_v23, 0.0  ;;  %v929_v23 = vmul.f32 %v892_v55, %v817_v3 }
 0x1af   : > { %1593 = vmatpush3.bf16.msra.mxu1 %v767_v27 }
 0x1b0   : > { %1594 = vmatprep.subr.bf16.mxu1 %v766_v32  ;;  %v920_v49 = vmul.f32 %v847_v4, %v808_v29  ;;  %v803_v29 = vadd.f32 %v2399_v5, %v2368_v20 }
 0x1b3   : > { %1595 = vmatpush3.bf16.msra.mxu1 %v766_v32 }
 0x1b4   : > { %1596 = vmatprep.subr.bf16.mxu1 %v765_v37 }
 0x1b7   : > { %1597 = vmatpush3.bf16.msra.mxu1 %v765_v37  ;;  %v813_v37 = vmax.f32 %v797_v16, 0.0  ;;  %v805_v16 = vadd.f32 %v2399_v5, %v2364_v17 }
 0x1b8   : > { %1598 = vmatprep.subr.bf16.mxu1 %v764_v42 }
 0x1b9   : > { %v925_v50 = vmul.f32 %v872_v13, %v813_v37  ;;  %v902_v13 = vpop.permute.xlu0 %901 }
 0x1bb   : > { %1599 = vmatpush3.bf16.msra.mxu1 %v764_v42 }
 0x1bc   : > { %1600 = vmatprep.subr.bf16.mxu1 %v763_v47 }
 0x1bf   : > { %1601 = vmatpush3.bf16.msra.mxu1 %v763_v47 }
 0x1c0   : > { %1602 = vmatprep.subr.bf16.mxu1 %v762_v52 }
 0x1c3   : > { %1603 = vmatpush3.bf16.msra.mxu1 %v762_v52  ;;  %v887_v52 = vpop.permute.xlu1 %886 }
 0x1c4   : > { %1604 = vmatprep.subr.bf16.mxu1 %v761_v56 }
 0x1c7   : > { %1605 = vmatpush3.bf16.msra.mxu1 %v761_v56  ;;  %v897_v8 = vpop.permute.xlu1 %896 }
 0x1c8   : > { %1606 = vmatprep.subr.bf16.mxu1 %v760_v58 }
 0x1cb   : > { %1607 = vmatpush3.bf16.msra.mxu1 %v760_v58  ;;  %v812_v58 = vmax.f32 %v796_v45, 0.0  ;;  %v912_v45 = vpop.permute.xlu0 %911 }
 0x1cd   : > { %v924_v11 = vmul.f32 %v867_v10, %v812_v58 }
 0x1ce   : > { %1609 = vmatmul.mubr.bf16.vlgmr.msra.gmra.mxu1 %v1757_v59 }
 0x1cf   : > { %1612 = vmatprep.mubr.bf16.mxu1 %v1758_v60  ;;  %v923_v60 = vmul.f32 %v862_v7, %v811_v44  ;;  %v806_v44 = vadd.f32 %v2399_v5, %v2366_v19 }
 0x1d6   : > { %1613 = vmatmul.mubr.bf16.gmra.mxu1 %v1759_v61  ;;  %v799_v61 = vadd.f32 %v2399_v5, %v2384_v34  ;;  %v800_v34 = vadd.f32 %v2399_v5, %v2381_v31 }
 0x1d7   : > { %1616 = vmatprep.mubr.bf16.mxu1 %v1760_v62 }
 0x1d8   : > { %v815_v12 = vmax.f32 %v799_v61, 0.0 }
 0x1da   : > { %v927_v37 = vmul.f32 %v882_v30, %v815_v12  ;;  %v804_v30 = vadd.f32 %v2399_v5, %v2374_v25 }
 0x1de   : > { %1617 = vmatmul.mubr.bf16.gmra.mxu1 %v1761_v63 }
 0x1df   : > { %1620 = vmatprep.mubr.bf16.mxu1 %v1762_v0 }
 0x1e6   : > { %1621 = vmatmul.mubr.bf16.gmra.mxu1 %v1763_v1  ;;  %v802_v1 = vadd.f32 %v2399_v5, %v2370_v22 }
 0x28e   : > { %v1610_v27 = vpop.f32.mrf.mxu1 }
 0x28f   : > { %v1026_v32 = vadd.f32 %v1610_v27, %v921_v18  ;;  %v818_v18 = vmax.f32 %v802_v1, 0.0  ;;  %v816_v27 = vmax.f32 %v800_v34, 0.0 }
 0x290   : > { %v1017_v39 = vpop.f32.mrf.mxu1 }
 0x291   : > { %v1089_v42 = vmul.f32 %v2409_v28, %v1026_v32  ;;  %v1018_v43 = vadd.f32 %v1017_v39, %v919_v33  ;;  %v930_v39 = vmul.f32 %v897_v8, %v818_v18 }
 0x292   : > { %v1611_v46 = vpop.f32.mrf.mxu1 }
 0x293   : > { %v2424_v47 = vadd.f32 %v2418_v38, %v1089_v42  ;;  %v1087_v35 = vmul.f32 %v2409_v28, %v1018_v43  ;;  %v1029_v48 = vadd.f32 %v1611_v46, %v922_v40  ;;  %v907_v40 = vpop.permute.xlu1 %906  ;;  %v821_v42 = vmax.f32 %v805_v16, 0.0 }
 0x294   : > { %v1020_v53 = vpop.f32.mrf.mxu1 }
 0x295   : > { %v2430_v56 = vadd.f32 %v2418_v38, %v1087_v35  ;;  %v1090_v41 = vmul.f32 %v2409_v28, %v1029_v48  ;;  %v1021_v57 = vadd.f32 %v1020_v53, %v920_v49  ;;  %v819_v48 = vmax.f32 %v803_v29, 0.0 }
 0x296   : > { %v1614_v59 = vpop.f32.mrf.mxu1  ;;  %v933_v19 = vmul.f32 %v912_v45, %v821_v42 }
 0x297   : > { %v2436_v62 = vadd.f32 %v2418_v38, %v1090_v41  ;;  %v1088_v63 = vmul.f32 %v2409_v28, %v1021_v57  ;;  %v1042_v0 = vadd.f32 %v1614_v59, %v925_v50  ;;  %v928_v50 = vmul.f32 %v887_v52, %v816_v27 }
 0x298   : > { %v1033_v2 = vpop.f32.mrf.mxu1  ;;  %v822_v41 = vmax.f32 %v806_v44, 0.0  ;;  %v931_v61 = vmul.f32 %v902_v13, %v819_v48 }
 0x299   : > { %v2442_v4 = vadd.f32 %v2418_v38, %v1088_v63  ;;  %v1093_v6 = vmul.f32 %v2409_v28, %v1042_v0  ;;  %v1034_v7 = vadd.f32 %v1033_v2, %v923_v60  ;;  %v917_v60 = vpop.permute.xlu1 %916  ;;  %v820_v63 = vmax.f32 %v804_v30, 0.0 }
 0x29a   : > { %v1615_v9 = vpop.f32.mrf.mxu1  ;;  %v934_v1 = vmul.f32 %v917_v60, %v822_v41 }
 0x29b   : > { %v2448_v14 = vadd.f32 %v2418_v38, %v1093_v6  ;;  %v1091_v22 = vmul.f32 %v2409_v28, %v1034_v7  ;;  %v1045_v15 = vadd.f32 %v1615_v9, %v926_v26 }
 0x29c   : > { %v1036_v21 = vpop.f32.mrf.mxu1 }
 0x29d   : > { %v2454_v24 = vadd.f32 %v2418_v38, %v1091_v22  ;;  %v1094_v31 = vmul.f32 %v2409_v28, %v1045_v15  ;;  %v1037_v10 = vadd.f32 %v1036_v21, %v924_v11  ;;  %v932_v11 = vmul.f32 %v907_v40, %v820_v63 }
 0x29e   : > { %v1618_v32 = vpop.f32.mrf.mxu1 }
 0x29f   : > { %v2460_v33 = vadd.f32 %v2418_v38, %v1094_v31  ;;  %v1092_v36 = vmul.f32 %v2409_v28, %v1037_v10  ;;  %v1058_v17 = vadd.f32 %v1618_v32, %v929_v23 }
 0x2a0   : > { %v1049_v43 = vpop.f32.mrf.mxu1 }
 0x2a1   : > { %v2466_v46 = vadd.f32 %v2418_v38, %v1092_v36  ;;  %v1097_v20 = vmul.f32 %v2409_v28, %v1058_v17  ;;  %v1050_v35 = vadd.f32 %v1049_v43, %v927_v37 }
 0x2a2   : > { %v1619_v49 = vpop.f32.mrf.mxu1 }
 0x2a3   : > { %v2472_v51 = vadd.f32 %v2418_v38, %v1097_v20  ;;  %v1095_v53 = vmul.f32 %v2409_v28, %v1050_v35  ;;  %v1061_v54 = vadd.f32 %v1619_v49, %v930_v39 }
 0x2a4   : > { %v1052_v55 = vpop.f32.mrf.mxu1 }
 0x2a5   : > { %v2476_v57 = vadd.f32 %v2418_v38, %v1095_v53  ;;  %v1098_v58 = vmul.f32 %v2409_v28, %v1061_v54  ;;  %v1053_v59 = vadd.f32 %v1052_v55, %v928_v50 }
 0x2a6   : > { %v1622_v52 = vpop.f32.mrf.mxu1 }
 0x2a7   : > { %v2480_v25 = vadd.f32 %v2418_v38, %v1098_v58  ;;  %v1096_v5 = vmul.f32 %v2409_v28, %v1053_v59  ;;  %v1074_v0 = vadd.f32 %v1622_v52, %v933_v19 }
 0x2a8   : > { %v1065_v26 = vpop.f32.mrf.mxu1 }
 0x2a9   : > { %v2484_v2 = vadd.f32 %v2418_v38, %v1096_v5  ;;  %v1101_v3 = vmul.f32 %v2409_v28, %v1074_v0  ;;  %v1066_v6 = vadd.f32 %v1065_v26, %v931_v61 }
 0x2aa   : > { %v1623_v7 = vpop.f32.mrf.mxu1 }
 0x2ab   : > { %v1124_v34 = vadd.f32 %v2418_v38, %v1101_v3  ;;  %v1099_v8 = vmul.f32 %v2409_v28, %v1066_v6  ;;  %v1077_v9 = vadd.f32 %v1623_v7, %v934_v1 }
 0x2ac   : > { %v1068_v12 = vpop.f32.mrf.mxu1 }
 0x2ad   : > { %v1122_v13 = vadd.f32 %v2418_v38, %v1099_v8  ;;  %v1102_v22 = vmul.f32 %v2409_v28, %v1077_v9  ;;  %v1069_v15 = vadd.f32 %v1068_v12, %v932_v11  ;;  %1129 = sbr.rel (%p1494_p12) target bundleno = 700 (0x2bc), region = 92 }
 0x2af   : > { %v1125_v16 = vadd.f32 %v2418_v38, %v1102_v22  ;;  %v1100_v18 = vmul.f32 %v2409_v28, %v1069_v15 }
 0x2b1   : > { %v1123_v21 = vadd.f32 %v2418_v38, %v1100_v18 }
 0x2b2   : > { %v1130_v23 = vmax.f32 %v2430_v56, 0.0  ;;  %v1131_v31 = vmax.f32 %v2442_v4, 0.0  ;;  %v1132_v10 = vmax.f32 %v2424_v47, 0.0  ;;  %v1133_v27 = vmax.f32 %v2436_v62, 0.0 }
 0x2b3   : > { %v1134_v29 = vmax.f32 %v2454_v24, 0.0  ;;  %v1135_v32 = vmax.f32 %v2466_v46, 0.0  ;;  %v1136_v28 = vmax.f32 %v2448_v14, 0.0  ;;  %v1137_v38 = vmax.f32 %v2460_v33, 0.0 }
 0x2b4   : > { %1146 = vst [vmem:[#allocation2 + $0x30] sm:$0xff] %v1130_v23  ;;  %1147 = vst [vmem:[#allocation2] sm:$0xff] %v1131_v31  ;;  %v1138_v36 = vmax.f32 %v2476_v57, 0.0  ;;  %v1139_v17 = vmax.f32 %v2484_v2, 0.0  ;;  %v1140_v37 = vmax.f32 %v2472_v51, 0.0  ;;  %v1141_v39 = vmax.f32 %v2480_v25, 0.0 }
 0x2b5   : > { %1148 = vst [vmem:[#allocation2 + $0x58] sm:$0xff] %v1132_v10  ;;  %1149 = vst [vmem:[#allocation2 + $0x18] sm:$0xff] %v1133_v27  ;;  %v1142_v40 = vmax.f32 %v1122_v13, 0.0  ;;  %v1143_v42 = vmax.f32 %v1123_v21, 0.0  ;;  %v1144_v43 = vmax.f32 %v1124_v34, 0.0  ;;  %v1145_v44 = vmax.f32 %v1125_v16, 0.0 }
 0x2b6   : > { %1150 = vst [vmem:[#allocation2 + $0x50] sm:$0xff] %v1134_v29  ;;  %1151 = vst [vmem:[#allocation2 + $0x68] sm:$0xff] %v1135_v32 }
 0x2b7   : > { %1152 = vst [vmem:[#allocation2 + $0x8] sm:$0xff] %v1136_v28  ;;  %1153 = vst [vmem:[#allocation2 + $0x48] sm:$0xff] %v1137_v38 }
 0x2b8   : > { %1154 = vst [vmem:[#allocation2 + $0x40] sm:$0xff] %v1138_v36  ;;  %1155 = vst [vmem:[#allocation2 + $0x20] sm:$0xff] %v1139_v17 }
 0x2b9   : > { %1156 = vst [vmem:[#allocation2 + $0x10] sm:$0xff] %v1140_v37  ;;  %1157 = vst [vmem:[#allocation2 + $0x38] sm:$0xff] %v1141_v39 }
 0x2ba   : > { %1158 = vst [vmem:[#allocation2 + $0x60] sm:$0xff] %v1142_v40  ;;  %1159 = vst [vmem:[#allocation2 + $0x70] sm:$0xff] %v1143_v42 }
 0x2bb   : > { %1160 = vst [vmem:[#allocation2 + $0x78] sm:$0xff] %v1144_v43  ;;  %1161 = vst [vmem:[#allocation2 + $0x28] sm:$0xff] %v1145_v44 }
 0x2bc PF: > { %p1495_p13 = scmp.ne.s32.totalorder %s2070_s21, 4 }
 0x2bd   : > { %s2607_s11 = sld [smem:[#allocation23_spill]] (!%p1495_p13) }
 0x2be   : > { %1165 = sbr.rel (%p1495_p13) target bundleno = 1134 (0x46e), region = 96  ;;  %s2608_s27 = sld [smem:[#allocation25_spill]] (!%p1495_p13) }
 0x2c3   : > { %v1174_v45 = vpack.c.bf16 %v1125_v16, %v1124_v34  ;;  %v1764_v20 = vld [vmem:[#allocation11 + $0x38] sm:$0xff]   ;;  %v1988_v35 = vmov 0.0   ;;  %v1173_v48 = vpack.c.bf16 %v1123_v21, %v1122_v13  ;;  %vm1989_vm0 = vmmov 0   ;;  %v1765_v49 = vld [vmem:[#allocation11 + $0x30] sm:$0xff]   ;;  %v1766_v30 = vld [vmem:[#allocation11 + $0x28] sm:$0xff]  }
 0x2c4   : > { %1624 = vmatprep.subr.bf16.mxu0 %v1988_v35  ;;  %1644 = vmatprep.subr.bf16.mxu1 %v1988_v35  ;;  %v1172_v50 = vpack.c.bf16 %v2480_v25, %v2472_v51  ;;  %v1171_v53 = vpack.c.bf16 %v2484_v2, %v2476_v57  ;;  %v1767_v54 = vld [vmem:[#allocation11 + $0x20] sm:$0xff]   ;;  %v1170_v19 = vpack.c.bf16 %v2460_v33, %v2448_v14  ;;  %v1768_v55 = vld [vmem:[#allocation11 + $0x18] sm:$0xff]   ;;  %v1769_v41 = vld [vmem:[#allocation11 + $0x10] sm:$0xff]  }
 0x2c5   : > { %1625 = vmatpush3.bf16.msra.mxu0 %v1174_v45  ;;  %1640 = vmatprep.mubr.msk.bf16.mxu0 %vm1989_vm0, %v1988_v35  ;;  %v1169_v51 = vpack.c.bf16 %v2466_v46, %v2454_v24  ;;  %v1168_v57 = vpack.c.bf16 %v2436_v62, %v2424_v47  ;;  %v1770_v58 = vld [vmem:[#allocation11 + $0x8] sm:$0xff]   ;;  %v1167_v14 = vpack.c.bf16 %v2442_v4, %v2430_v56  ;;  %v1166_v24 = vld [vmem:[%s2607_s11] sm:$0xf]  ;;  %v1771_v33 = vld [vmem:[#allocation11] sm:$0xff]  }
 0x2c6   : > { %1626 = vmatprep.subr.bf16.mxu0 %v1988_v35  ;;  %1645 = vmatpush3.bf16.msra.mxu1 %v1764_v20  ;;  %v1496_v56 = vld [vmem:[%s2608_s27] ss:$0 sm:$0xff] }
 0x2c7   : > { %1660 = vmatprep.mubr.msk.bf16.mxu1 %vm1989_vm0, %v1988_v35  ;;  %1646 = vmatprep.subr.bf16.mxu1 %v1988_v35 }
 0x2c9   : > { %1627 = vmatpush3.bf16.msra.mxu0 %v1173_v48 }
 0x2ca   : > { %1628 = vmatprep.subr.bf16.mxu0 %v1988_v35  ;;  %1647 = vmatpush3.bf16.msra.mxu1 %v1765_v49 }
 0x2cb   : > { %1648 = vmatprep.subr.bf16.mxu1 %v1988_v35 }
 0x2cd   : > { %1629 = vmatpush3.bf16.msra.mxu0 %v1172_v50 }
 0x2ce   : > { %1630 = vmatprep.subr.bf16.mxu0 %v1988_v35  ;;  %1649 = vmatpush3.bf16.msra.mxu1 %v1766_v30 }
 0x2cf   : > { %1650 = vmatprep.subr.bf16.mxu1 %v1988_v35 }
 0x2d1   : > { %1631 = vmatpush3.bf16.msra.mxu0 %v1171_v53 }
 0x2d2   : > { %1632 = vmatprep.subr.bf16.mxu0 %v1988_v35  ;;  %1651 = vmatpush3.bf16.msra.mxu1 %v1767_v54 }
 0x2d3   : > { %1652 = vmatprep.subr.bf16.mxu1 %v1988_v35 }
 0x2d5   : > { %1633 = vmatpush3.bf16.msra.mxu0 %v1170_v19 }
 0x2d6   : > { %1634 = vmatprep.subr.bf16.mxu0 %v1988_v35  ;;  %1653 = vmatpush3.bf16.msra.mxu1 %v1768_v55 }
 0x2d7   : > { %1654 = vmatprep.subr.bf16.mxu1 %v1988_v35 }
 0x2d9   : > { %1635 = vmatpush3.bf16.msra.mxu0 %v1169_v51 }
 0x2da   : > { %1636 = vmatprep.subr.bf16.mxu0 %v1988_v35  ;;  %1655 = vmatpush3.bf16.msra.mxu1 %v1769_v41 }
 0x2db   : > { %1656 = vmatprep.subr.bf16.mxu1 %v1988_v35 }
 0x2dd   : > { %1637 = vmatpush3.bf16.msra.mxu0 %v1168_v57 }
 0x2de   : > { %1638 = vmatprep.subr.bf16.mxu0 %v1988_v35  ;;  %1657 = vmatpush3.bf16.msra.mxu1 %v1770_v58 }
 0x2df   : > { %1658 = vmatprep.subr.bf16.mxu1 %v1988_v35 }
 0x2e1   : > { %1639 = vmatpush3.bf16.msra.mxu0 %v1167_v14 }
 0x2e2   : > { %1659 = vmatpush3.bf16.msra.mxu1 %v1771_v33 }
 0x2e4   : > { %1641 = vmatmul.mubr.bf16.vlgmr.msra.gmra.mxu0 %v1166_v24 }
 0x3a4   : > { %v1209_v47 = vpop.f32.mrf.mxu0 }
 0x3a5   : > { %v1215_v62 = vpack.c.bf16 %v1209_v47, %v1209_v47 }
 0x3a6   : > { %v1642_v46 = vpop.f32.mrf.mxu0 }
 0x3a7   : > { %1661 = vmatmul.mubr.bf16.vlgmr.msra.gmra.mxu1 %v1215_v62 }
 0x3a8   : > { %v1212_v59 = vpop.f32.mrf.mxu0 }
 0x3aa   : > { %v1643_v60 = vpop.f32.mrf.mxu0 }
 0x467   : > { %v1321_v4 = vpop.f32.mrf.mxu1 }
 0x468   : > { %v1322_v52 = vadd.f32 %v1496_v56, %v1321_v4 }
 0x469   : > { %v1662_v61 = vpop.f32.mrf.mxu1 }
 0x46a   : > { %1327 = vst [vmem:[#allocation12] sm:$0xff] %v1322_v52 }
 0x46b   : > { %v1324_v63 = vpop.f32.mrf.mxu1 }
 0x46d   : > { %v1663_v25 = vpop.f32.mrf.mxu1 }
 0x46e PF: > { %s1990_s16 = smov [#allocation12]  }
 0x46f   : > { %s1335_s25 = sshll.u32 %s1990_s16, 4  ;;  %s1336_s25 = int_to_ptr.vmem [resolvable:$true] %s1335_s25 }
 0x470   : > { %s1908_s13 = scalar_lea.vmem %s1336_s25, 128  ;;  %p1915_p2 = scmp.lt.s32.totalorder %s1336_s25, %s1336_s25 }
 0x471   : > { %p1909_p5 = scmp.ne.s32.totalorder %s1336_s25, %s1908_s13  ;;  %p1916_p7 = scmp.lt.s32.totalorder %s1908_s13, %s1908_s13 }
 0x473   : > { %p1910_p6 = pnand %p1909_p5, %p1494_p12  ;;  %p1917_p1 = por %p1916_p7, %p1915_p2 }
 0x475   : > { %p1911_p8 = pneg %p1910_p6 }
 0x477   : > { %p1918_p4 = pnand %p1917_p1, %p1911_p8 }
 0x479   : > { %1921 = shalt.err (!%p1918_p4)
}
 0x47a   : > { %s2609_s6 = sld [smem:[#allocation26_spill]] }
 0x480   : > { %1679 = dma.vmem_to_hbm [thread:$0]  (%p1494_p12), %s1336_s25, 128, %s2609_s6, [#allocation5]  }
 0x481   : > { %1961 = dma.done.wait (%p1494_p12), [#allocation5], 128  }
 0x482   : > { %1963 = vsyncadd (%p1494_p12), [#allocation5], 4294967168 }
 0x483 PF: > { %s2610_s20 = sld [smem:[#allocation18_spill]]  ;;  %s2613_s17 = smov %s1970_s18 }
 0x484   : > { %s2611_s12 = sld [smem:[#allocation17_spill]] }
 0x485   : > { %s2612_s19 = sld [smem:[#allocation19_spill]] }
 0x489   : > { %p26_p3 = scmp.ge.s32.totalorder %s2610_s20, 7  }
 0x48a   : > { %s2614_s18 = smov %s2611_s12 }
 0x48b   :  { %28 = sbr.rel (!%p26_p3) target bundleno = 15 (0xf), region = 151 }
 0x490   :  { %1348 = vsyncpa [#allocation4], 1 }
 0x491   :  { %1350 = vsyncpa [#allocation4 + $0x1], 1 }
 0x492   :  { %1351 = vsyncpa [#allocation7], 1 }
 0x493   :  { %1353 = vsyncpa [#allocation7 + $0x1], 1 }
 0x494   :  { %1354 = vsyncpa [#allocation10], 1 }
 0x495   :  { %1355 = vsyncpa [#allocation5], 1 }
 0x496   :  { %1357 = vsyncpa [#allocation5 + $0x1], 1 }

</bundles_post_ra>
